<compile_context>
chip_gen: v5e
topology: v5e:2x2
jax: 0.10.0
libtpu: 0.0.40
codegen_flags: <defaults>
</compile_context>

<pallas_src>
import jax
import jax.numpy as jnp
from jax.experimental import pallas as pl
from jax.experimental.pallas import tpu as pltpu


def mlp_kernel(x_ref, w1_ref, b1_ref, w2_ref, b2_ref, w3_ref, b3_ref,
               w4_ref, b4_ref, o_ref):
    # x / weights are bf16, biases f32; every dot accumulates in f32 on the
    # MXU, ReLU + bias-add run on the VPU in f32.
    h = jnp.dot(x_ref[...], w1_ref[...], preferred_element_type=jnp.float32)
    h = jnp.maximum(h + b1_ref[...], 0.0)
    h = jnp.dot(h.astype(w2_ref.dtype), w2_ref[...],
                preferred_element_type=jnp.float32)
    h = jnp.maximum(h + b2_ref[...], 0.0)
    h = jnp.dot(h.astype(w3_ref.dtype), w3_ref[...],
                preferred_element_type=jnp.float32)
    h = jnp.maximum(h + b3_ref[...], 0.0)
    h = jnp.dot(h.astype(w4_ref.dtype), w4_ref[...],
                preferred_element_type=jnp.float32)
    o_ref[...] = (h + b4_ref[...]).astype(o_ref.dtype)


def _choose_tile(n, tile_m):
    """Pick a batch tile: big (default 512), >=2 grid steps when batch allows
    (v7x megacore), multiple of 8 when it is not the full batch dim."""
    if n <= tile_m:
        if n >= 256:
            # split into (at least) 2 steps so both v7x TensorCores get work
            tm = (((n + 1) // 2) + 7) // 8 * 8
            return min(tm, n)
        return n
    return tile_m


def mlp_forward(x, params, *, tile_m=512, compute_dtype=jnp.bfloat16):
    """x: (N, 784) float32. params: (w1,b1,w2,b2,w3,b3,w4,b4), weights stored
    (in, out) so the kernel computes x @ W + b (same math as torch.nn.Linear)."""
    w1, b1, w2, b2, w3, b3, w4, b4 = params
    n, d_in = x.shape
    d_out = w4.shape[1]
    d_pad = 128  # lane-dense padded head width

    # Pad the 10-wide head to 128 lanes -> unmasked stores, clean vreg layout.
    w4p = jnp.zeros((w4.shape[0], d_pad), w4.dtype).at[:, :d_out].set(w4)
    b4p = jnp.zeros((1, d_pad), b4.dtype).at[:, :d_out].set(b4)

    # bf16 inputs/weights for the MXU + halved HBM traffic; f32 biases.
    xc = x.astype(compute_dtype)
    w1c, w2c, w3c, w4c = (w.astype(compute_dtype) for w in (w1, w2, w3, w4p))
    b1c, b2c, b3c, b4c = (b.astype(jnp.float32) for b in (b1, b2, b3, b4p))

    tm = _choose_tile(n, tile_m)
    grid = (pl.cdiv(n, tm),)

    def full_spec(arr):
        # weight/bias blocks: full array, same block every grid step
        return pl.BlockSpec(arr.shape, lambda i: (0,) * arr.ndim)

    flops = 2 * n * (d_in * 256 + 256 * 128 + 128 * 32 + 32 * d_pad)
    bytes_accessed = (
        xc.size * xc.dtype.itemsize
        + sum(a.size * a.dtype.itemsize
              for a in (w1c, b1c, w2c, b2c, w3c, b3c, w4c, b4c))
        + n * d_pad * 4)

    out_padded = pl.pallas_call(
        mlp_kernel,
        out_shape=jax.ShapeDtypeStruct((n, d_pad), jnp.float32),
        grid_spec=pltpu.PrefetchScalarGridSpec(
            num_scalar_prefetch=0,
            grid=grid,
            in_specs=[
                pl.BlockSpec((tm, d_in), lambda i: (i, 0)),   # x tile over batch
                full_spec(w1c), full_spec(b1c),
                full_spec(w2c), full_spec(b2c),
                full_spec(w3c), full_spec(b3c),
                full_spec(w4c), full_spec(b4c),
            ],
            out_specs=pl.BlockSpec((tm, d_pad), lambda i: (i, 0)),
        ),
        compiler_params=pltpu.CompilerParams(
            dimension_semantics=("parallel",)),
        cost_estimate=pl.CostEstimate(
            flops=flops, transcendentals=0, bytes_accessed=bytes_accessed),
    )(xc, w1c, b1c, w2c, b2c, w3c, b3c, w4c, b4c)

    return out_padded[:, :d_out].astype(x.dtype)


def init_params(key):
    """Deterministic init mimicking torch.nn.Linear defaults (U(+-1/sqrt(fan_in)))."""
    dims = [(784, 256), (256, 128), (128, 32), (32, 10)]
    params = []
    for fan_in, fan_out in dims:
        key, kw, kb = jax.random.split(key, 3)
        bound = 1.0 / jnp.sqrt(fan_in)
        w = jax.random.uniform(kw, (fan_in, fan_out), jnp.float32, -bound, bound)
        b = jax.random.uniform(kb, (1, fan_out), jnp.float32, -bound, bound)
        params += [w, b]
    return tuple(params)


def reference_forward(x, params):
    w1, b1, w2, b2, w3, b3, w4, b4 = params
    h = jnp.maximum(x @ w1 + b1, 0.0)
    h = jnp.maximum(h @ w2 + b2, 0.0)
    h = jnp.maximum(h @ w3 + b3, 0.0)
    return h @ w4 + b4


if __name__ == "__main__":
    key = jax.random.PRNGKey(0)
    key, kx = jax.random.split(key)
    params = init_params(key)

    # Small-shape check (single tile path).
    batch = 8
    x = jax.random.normal(kx, (batch, 784), jnp.float32)
    out = jax.block_until_ready(mlp_forward(x, params))
    ref = reference_forward(x, params)
    assert out.shape == (batch, 10), out.shape
    # bf16 inputs/weights with f32 accumulation -> loosened tolerance vs f32 ref.
    assert jnp.allclose(out, ref, atol=2e-2, rtol=2e-2), "mismatch vs reference"

    # Multi-step grid + ragged last tile path.
    key, kx2 = jax.random.split(key)
    x2 = jax.random.normal(kx2, (520, 784), jnp.float32)
    out2 = jax.block_until_ready(mlp_forward(x2, params))
    ref2 = reference_forward(x2, params)
    assert out2.shape == (520, 10), out2.shape
    assert jnp.allclose(out2, ref2, atol=2e-2, rtol=2e-2), "mismatch (tiled) vs reference"

    print("KERNEL_OK")
</pallas_src>

<mosaic_0001>
module attributes {stable_mosaic.version = 11 : i64} {
  func.func @mlp_kernel(%arg0: i32, %arg1: memref<8x784xbf16, #tpu.memory_space<vmem>>, %arg2: memref<784x256xbf16, #tpu.memory_space<vmem>>, %arg3: memref<1x256xf32, #tpu.memory_space<vmem>>, %arg4: memref<256x128xbf16, #tpu.memory_space<vmem>>, %arg5: memref<1x128xf32, #tpu.memory_space<vmem>>, %arg6: memref<128x32xbf16, #tpu.memory_space<vmem>>, %arg7: memref<1x32xf32, #tpu.memory_space<vmem>>, %arg8: memref<32x128xbf16, #tpu.memory_space<vmem>>, %arg9: memref<1x128xf32, #tpu.memory_space<vmem>>, %arg10: memref<8x128xf32, #tpu.memory_space<vmem>>) attributes {dimension_semantics = [#tpu.dimension_semantics<parallel>], iteration_bounds = array<i64: 1>, scalar_prefetch = 0 : i64, scratch_operands = 0 : i64, tpu.core_type = #tpu.core_type<tc>, window_params = [{transform_indices = @transform_0, window_bounds = array<i64: 8, 784>}, {pipeline_mode = #tpu.pipeline_mode<synchronous>, transform_indices = @transform_1, window_bounds = array<i64: 784, 256>}, {pipeline_mode = #tpu.pipeline_mode<synchronous>, transform_indices = @transform_2, window_bounds = array<i64: 1, 256>}, {pipeline_mode = #tpu.pipeline_mode<synchronous>, transform_indices = @transform_3, window_bounds = array<i64: 256, 128>}, {pipeline_mode = #tpu.pipeline_mode<synchronous>, transform_indices = @transform_4, window_bounds = array<i64: 1, 128>}, {pipeline_mode = #tpu.pipeline_mode<synchronous>, transform_indices = @transform_5, window_bounds = array<i64: 128, 32>}, {pipeline_mode = #tpu.pipeline_mode<synchronous>, transform_indices = @transform_6, window_bounds = array<i64: 1, 32>}, {pipeline_mode = #tpu.pipeline_mode<synchronous>, transform_indices = @transform_7, window_bounds = array<i64: 32, 128>}, {pipeline_mode = #tpu.pipeline_mode<synchronous>, transform_indices = @transform_8, window_bounds = array<i64: 1, 128>}, {transform_indices = @transform_9, window_bounds = array<i64: 8, 128>}]} {
    %c0 = arith.constant 0 : index
    %c0_0 = arith.constant 0 : index
    %0 = vector.load %arg1[%c0, %c0_0] : memref<8x784xbf16, #tpu.memory_space<vmem>>, vector<8x784xbf16>
    %c0_1 = arith.constant 0 : index
    %c0_2 = arith.constant 0 : index
    %1 = vector.load %arg2[%c0_1, %c0_2] : memref<784x256xbf16, #tpu.memory_space<vmem>>, vector<784x256xbf16>
    %cst = arith.constant dense<0.000000e+00> : vector<8x256xf32>
    %2 = tpu.matmul %0, %1, %cst {dimension_numbers = #tpu.dot_dimension_numbers<[1], [0], [0], [1], [0, 0, 1, 1], [], []>} : vector<8x784xbf16>, vector<784x256xbf16>, vector<8x256xf32> -> vector<8x256xf32>
    %c0_3 = arith.constant 0 : index
    %c0_4 = arith.constant 0 : index
    %3 = vector.load %arg3[%c0_3, %c0_4] : memref<1x256xf32, #tpu.memory_space<vmem>>, vector<1x256xf32>
    %4 = vector.broadcast %3 : vector<1x256xf32> to vector<8x256xf32>
    %5 = arith.addf %2, %4 : vector<8x256xf32>
    %cst_5 = arith.constant 0.000000e+00 : f32
    %6 = vector.broadcast %cst_5 : f32 to vector<8x256xf32>
    %7 = arith.maximumf %5, %6 : vector<8x256xf32>
    %8 = arith.truncf %7 : vector<8x256xf32> to vector<8x256xbf16>
    %c0_6 = arith.constant 0 : index
    %c0_7 = arith.constant 0 : index
    %9 = vector.load %arg4[%c0_6, %c0_7] : memref<256x128xbf16, #tpu.memory_space<vmem>>, vector<256x128xbf16>
    %cst_8 = arith.constant dense<0.000000e+00> : vector<8x128xf32>
    %10 = tpu.matmul %8, %9, %cst_8 {dimension_numbers = #tpu.dot_dimension_numbers<[1], [0], [0], [1], [0, 0, 1, 1], [], []>} : vector<8x256xbf16>, vector<256x128xbf16>, vector<8x128xf32> -> vector<8x128xf32>
    %c0_9 = arith.constant 0 : index
    %c0_10 = arith.constant 0 : index
    %11 = vector.load %arg5[%c0_9, %c0_10] : memref<1x128xf32, #tpu.memory_space<vmem>>, vector<1x128xf32>
    %12 = vector.broadcast %11 : vector<1x128xf32> to vector<8x128xf32>
    %13 = arith.addf %10, %12 : vector<8x128xf32>
    %cst_11 = arith.constant 0.000000e+00 : f32
    %14 = vector.broadcast %cst_11 : f32 to vector<8x128xf32>
    %15 = arith.maximumf %13, %14 : vector<8x128xf32>
    %16 = arith.truncf %15 : vector<8x128xf32> to vector<8x128xbf16>
    %c0_12 = arith.constant 0 : index
    %c0_13 = arith.constant 0 : index
    %17 = vector.load %arg6[%c0_12, %c0_13] : memref<128x32xbf16, #tpu.memory_space<vmem>>, vector<128x32xbf16>
    %cst_14 = arith.constant dense<0.000000e+00> : vector<8x32xf32>
    %18 = tpu.matmul %16, %17, %cst_14 {dimension_numbers = #tpu.dot_dimension_numbers<[1], [0], [0], [1], [0, 0, 1, 1], [], []>} : vector<8x128xbf16>, vector<128x32xbf16>, vector<8x32xf32> -> vector<8x32xf32>
    %c0_15 = arith.constant 0 : index
    %c0_16 = arith.constant 0 : index
    %19 = vector.load %arg7[%c0_15, %c0_16] : memref<1x32xf32, #tpu.memory_space<vmem>>, vector<1x32xf32>
    %20 = vector.broadcast %19 : vector<1x32xf32> to vector<8x32xf32>
    %21 = arith.addf %18, %20 : vector<8x32xf32>
    %cst_17 = arith.constant 0.000000e+00 : f32
    %22 = vector.broadcast %cst_17 : f32 to vector<8x32xf32>
    %23 = arith.maximumf %21, %22 : vector<8x32xf32>
    %24 = arith.truncf %23 : vector<8x32xf32> to vector<8x32xbf16>
    %c0_18 = arith.constant 0 : index
    %c0_19 = arith.constant 0 : index
    %25 = vector.load %arg8[%c0_18, %c0_19] : memref<32x128xbf16, #tpu.memory_space<vmem>>, vector<32x128xbf16>
    %cst_20 = arith.constant dense<0.000000e+00> : vector<8x128xf32>
    %26 = tpu.matmul %24, %25, %cst_20 {dimension_numbers = #tpu.dot_dimension_numbers<[1], [0], [0], [1], [0, 0, 1, 1], [], []>} : vector<8x32xbf16>, vector<32x128xbf16>, vector<8x128xf32> -> vector<8x128xf32>
    %c0_21 = arith.constant 0 : index
    %c0_22 = arith.constant 0 : index
    %27 = vector.load %arg9[%c0_21, %c0_22] : memref<1x128xf32, #tpu.memory_space<vmem>>, vector<1x128xf32>
    %28 = vector.broadcast %27 : vector<1x128xf32> to vector<8x128xf32>
    %29 = arith.addf %26, %28 : vector<8x128xf32>
    %c0_23 = arith.constant 0 : index
    %c0_24 = arith.constant 0 : index
    %30 = vector.load %arg10[%c0_23, %c0_24] : memref<8x128xf32, #tpu.memory_space<vmem>>, vector<8x128xf32>
    tpu.vector_store %arg10[%c0_23, %c0_24], %29 {strides = array<i32>} : memref<8x128xf32, #tpu.memory_space<vmem>>, vector<8x128xf32>,
    return
  }
  func.func @transform_0(%arg0: i32) -> (i32, i32) {
    %c0_i32 = arith.constant 0 : i32
    %c0_i32_0 = arith.constant 0 : i32
    return %arg0, %c0_i32 : i32, i32
  }
  func.func @transform_1(%arg0: i32) -> (i32, i32) {
    %c0_i32 = arith.constant 0 : i32
    %c0_i32_0 = arith.constant 0 : i32
    %c0_i32_1 = arith.constant 0 : i32
    return %c0_i32, %c0_i32_0 : i32, i32
  }
  func.func @transform_2(%arg0: i32) -> (i32, i32) {
    %c0_i32 = arith.constant 0 : i32
    %c0_i32_0 = arith.constant 0 : i32
    %c0_i32_1 = arith.constant 0 : i32
    return %c0_i32, %c0_i32_0 : i32, i32
  }
  func.func @transform_3(%arg0: i32) -> (i32, i32) {
    %c0_i32 = arith.constant 0 : i32
    %c0_i32_0 = arith.constant 0 : i32
    %c0_i32_1 = arith.constant 0 : i32
    return %c0_i32, %c0_i32_0 : i32, i32
  }
  func.func @transform_4(%arg0: i32) -> (i32, i32) {
    %c0_i32 = arith.constant 0 : i32
    %c0_i32_0 = arith.constant 0 : i32
    %c0_i32_1 = arith.constant 0 : i32
    return %c0_i32, %c0_i32_0 : i32, i32
  }
  func.func @transform_5(%arg0: i32) -> (i32, i32) {
    %c0_i32 = arith.constant 0 : i32
    %c0_i32_0 = arith.constant 0 : i32
    %c0_i32_1 = arith.constant 0 : i32
    return %c0_i32, %c0_i32_0 : i32, i32
  }
  func.func @transform_6(%arg0: i32) -> (i32, i32) {
    %c0_i32 = arith.constant 0 : i32
    %c0_i32_0 = arith.constant 0 : i32
    %c0_i32_1 = arith.constant 0 : i32
    return %c0_i32, %c0_i32_0 : i32, i32
  }
  func.func @transform_7(%arg0: i32) -> (i32, i32) {
    %c0_i32 = arith.constant 0 : i32
    %c0_i32_0 = arith.constant 0 : i32
    %c0_i32_1 = arith.constant 0 : i32
    return %c0_i32, %c0_i32_0 : i32, i32
  }
  func.func @transform_8(%arg0: i32) -> (i32, i32) {
    %c0_i32 = arith.constant 0 : i32
    %c0_i32_0 = arith.constant 0 : i32
    %c0_i32_1 = arith.constant 0 : i32
    return %c0_i32, %c0_i32_0 : i32, i32
  }
  func.func @transform_9(%arg0: i32) -> (i32, i32) {
    %c0_i32 = arith.constant 0 : i32
    %c0_i32_0 = arith.constant 0 : i32
    return %arg0, %c0_i32 : i32, i32
  }
}

</mosaic_0001>

<bundles_post_ra>
// kernel: tpu_custom_call.1
= control target key start
LH: loop header
LB: loop body
LE: loop exit
PB: predicated region body
PF: predicated region fallthrough
CT: control target
= control target key end

     0   :  { %14 = vsyncpa [#allocation3], 0  ;;  %s2038_s0 = inlined_call_operand.vmem [shape: bf16[8,784], index: 0, kind: input, shape index: {}]   ;;  %s2039_s1 = inlined_call_operand.hbm [shape: bf16[784,256], index: 1, kind: input, shape index: {}]   ;;  %s2040_s2 = inlined_call_operand.vmem [shape: f32[1,256], index: 2, kind: input, shape index: {}]   ;;  %s2041_s3 = inlined_call_operand.hbm [shape: bf16[256,128], index: 3, kind: input, shape index: {}]   ;;  %s2042_s4 = inlined_call_operand.vmem [shape: f32[1,128], index: 4, kind: input, shape index: {}]   ;;  %s2043_s5 = inlined_call_operand.vmem [shape: bf16[128,32], index: 5, kind: input, shape index: {}]   ;;  %s2044_s6 = inlined_call_operand.vmem [shape: f32[1,32], index: 6, kind: input, shape index: {}]   ;;  %s2045_s7 = inlined_call_operand.vmem [shape: bf16[32,128], index: 7, kind: input, shape index: {}]   ;;  %s2046_s8 = inlined_call_operand.vmem [shape: f32[1,128], index: 8, kind: input, shape index: {}]   ;;  %s2047_s9 = inlined_call_operand.hbm [shape: f32[8,128], index: 9, kind: output, shape index: {}]  }
   0x1   :  { %15 = vsyncpa [#allocation6], 0 }
   0x2   :  { %16 = vsyncpa [#allocation4], 0  ;;  %s23_s11 = sshll.u32 %s2039_s1, 4  ;;  %s1888_s12 = smov [#allocation2]   ;;  %s24_s11 = int_to_ptr.hbm [resolvable:$true] %s23_s11 }
   0x3   :  { %s25_s13 = sshll.u32 %s1888_s12, 4  ;;  %s38_s16 = sshll.u32 %s2041_s3, 4  ;;  %s26_s13 = int_to_ptr.vmem [resolvable:$true] %s25_s13  ;;  %s39_s16 = int_to_ptr.hbm [resolvable:$true] %s38_s16 }
   0x4   :  { %s1889_s17 = smov 128   ;;  %s1890_s18 = smov 8  }
   0x5   :  { %31 = dma.hbm_to_vmem [thread:$0]  %s24_s11, 12544, %s26_s13, [#allocation3], %s1889_s17, %s1889_s17, %s1890_s18  }
   0x6   :  { %s1891_s19 = smov [#allocation5]   ;;  %s1892_s21 = smov 64  }
   0x7   :  { %s40_s20 = sshll.u32 %s1891_s19, 4  ;;  %s1893_s22 = smov 4   ;;  %s41_s20 = int_to_ptr.vmem [resolvable:$true] %s40_s20 }
   0x8   :  { %46 = dma.hbm_to_vmem [thread:$0]  %s39_s16, 2048, %s41_s20, [#allocation6], %s1892_s21, %s1892_s21, %s1893_s22  }
   0x9   :  { %1882 = dma.done.wait [#allocation3], 12544  }
   0xa   :  { %1883 = vsyncadd [#allocation3], 4294954752 }
   0xb   :  { %1884 = dma.done.wait [#allocation6], 2048  }
   0xc   :  { %1885 = vsyncadd [#allocation6], 4294965248  ;;  %v1235_v0 = vld [vmem:[#allocation2 + $0x70] sm:$0xf]  ;;  %v1691_v1 = vld [vmem:[#allocation2 + $0x74] sm:$0xf0] }
   0xd   :  { %v1363_v2 = vld [vmem:[#allocation2 + $0x170] sm:$0xf]  ;;  %v1236_v3 = vor.u32 %v1691_v1, %v1235_v0  ;;  %v1723_v4 = vld [vmem:[#allocation2 + $0x174] sm:$0xf0]  ;;  %v1227_v11 = vld [vmem:[#allocation2 + $0x60] sm:$0xf] }
   0xe   :  { %v1427_v5 = vld [vmem:[#allocation2 + $0x1f0] sm:$0xf]  ;;  %v1739_v6 = vld [vmem:[#allocation2 + $0x1f4] sm:$0xf0]  ;;  %v1364_v7 = vor.u32 %v1723_v4, %v1363_v2  ;;  %v1689_v13 = vld [vmem:[#allocation2 + $0x64] sm:$0xf0] }
   0xf   :  { %v1428_v8 = vor.u32 %v1739_v6, %v1427_v5  ;;  %v1299_v9 = vld [vmem:[#allocation2 + $0xf0] sm:$0xf]  ;;  %v1707_v10 = vld [vmem:[#allocation2 + $0xf4] sm:$0xf0]  ;;  %692 = vmatpush.bf16.msra.mxu0 %v1236_v3  ;;  %v1355_v14 = vld [vmem:[#allocation2 + $0x160] sm:$0xf]  ;;  %v1228_v16 = vor.u32 %v1689_v13, %v1227_v11 }
  0x10   :  { %v1300_v12 = vor.u32 %v1707_v10, %v1299_v9  ;;  %v1721_v15 = vld [vmem:[#allocation2 + $0x164] sm:$0xf0]  ;;  %718 = vmatpush.bf16.msra.mxu2 %v1364_v7  ;;  %v1419_v18 = vld [vmem:[#allocation2 + $0x1e0] sm:$0xf]  ;;  %v1219_v23 = vld [vmem:[#allocation2 + $0x50] sm:$0xf] }
  0x11   :  { %731 = vmatpush.bf16.msra.mxu3 %v1428_v8  ;;  %v1356_v17 = vor.u32 %v1721_v15, %v1355_v14  ;;  %v1737_v19 = vld [vmem:[#allocation2 + $0x1e4] sm:$0xf0]  ;;  %v1291_v20 = vld [vmem:[#allocation2 + $0xe0] sm:$0xf]  ;;  %v1687_v24 = vld [vmem:[#allocation2 + $0x54] sm:$0xf0] }
  0x12   :  { %705 = vmatpush.bf16.msra.mxu1 %v1300_v12  ;;  %v1420_v21 = vor.u32 %v1737_v19, %v1419_v18  ;;  %v1705_v22 = vld [vmem:[#allocation2 + $0xe4] sm:$0xf0]  ;;  %v1347_v26 = vld [vmem:[#allocation2 + $0x150] sm:$0xf]  ;;  %v1719_v27 = vld [vmem:[#allocation2 + $0x154] sm:$0xf0]  ;;  %v1220_v29 = vor.u32 %v1687_v24, %v1219_v23 }
  0x13   :  { %v1292_v25 = vor.u32 %v1705_v22, %v1291_v20  ;;  %v1411_v28 = vld [vmem:[#allocation2 + $0x1d0] sm:$0xf]  ;;  %693 = vmatpush.bf16.msra.mxu0 %v1228_v16  ;;  %v1735_v30 = vld [vmem:[#allocation2 + $0x1d4] sm:$0xf0]  ;;  %v1348_v33 = vor.u32 %v1719_v27, %v1347_v26  ;;  %v1211_v35 = vld [vmem:[#allocation2 + $0x40] sm:$0xf] }
  0x14   :  { %v1283_v31 = vld [vmem:[#allocation2 + $0xd0] sm:$0xf]  ;;  %v1703_v32 = vld [vmem:[#allocation2 + $0xd4] sm:$0xf0]  ;;  %719 = vmatpush.bf16.msra.mxu2 %v1356_v17  ;;  %v1412_v34 = vor.u32 %v1735_v30, %v1411_v28  ;;  %v1685_v36 = vld [vmem:[#allocation2 + $0x44] sm:$0xf0] }
  0x15   :  { %732 = vmatpush.bf16.msra.mxu3 %v1420_v21  ;;  %v1339_v37 = vld [vmem:[#allocation2 + $0x140] sm:$0xf]  ;;  %v1284_v38 = vor.u32 %v1703_v32, %v1283_v31  ;;  %v1717_v39 = vld [vmem:[#allocation2 + $0x144] sm:$0xf0]  ;;  %v1212_v44 = vor.u32 %v1685_v36, %v1211_v35  ;;  %v1203_v47 = vld [vmem:[#allocation2 + $0x30] sm:$0xf] }
  0x16   :  { %706 = vmatpush.bf16.msra.mxu1 %v1292_v25  ;;  %v1403_v40 = vld [vmem:[#allocation2 + $0x1c0] sm:$0xf]  ;;  %v1733_v41 = vld [vmem:[#allocation2 + $0x1c4] sm:$0xf0]  ;;  %v1340_v45 = vor.u32 %v1717_v39, %v1339_v37  ;;  %v1683_v48 = vld [vmem:[#allocation2 + $0x34] sm:$0xf0] }
  0x17   :  { %v1275_v42 = vld [vmem:[#allocation2 + $0xc0] sm:$0xf]  ;;  %v1701_v43 = vld [vmem:[#allocation2 + $0xc4] sm:$0xf0]  ;;  %694 = vmatpush.bf16.msra.mxu0 %v1220_v29  ;;  %v1404_v46 = vor.u32 %v1733_v41, %v1403_v40  ;;  %v1331_v49 = vld [vmem:[#allocation2 + $0x130] sm:$0xf]  ;;  %v1204_v56 = vor.u32 %v1683_v48, %v1203_v47 }
  0x18   :  { %720 = vmatpush.bf16.msra.mxu2 %v1348_v33  ;;  %v1276_v50 = vor.u32 %v1701_v43, %v1275_v42  ;;  %v1715_v51 = vld [vmem:[#allocation2 + $0x134] sm:$0xf0]  ;;  %v1395_v52 = vld [vmem:[#allocation2 + $0x1b0] sm:$0xf]  ;;  %v1195_v59 = vld [vmem:[#allocation2 + $0x20] sm:$0xf] }
  0x19   :  { %733 = vmatpush.bf16.msra.mxu3 %v1412_v34  ;;  %v1731_v53 = vld [vmem:[#allocation2 + $0x1b4] sm:$0xf0]  ;;  %v1267_v54 = vld [vmem:[#allocation2 + $0xb0] sm:$0xf]  ;;  %v1332_v57 = vor.u32 %v1715_v51, %v1331_v49  ;;  %v1681_v60 = vld [vmem:[#allocation2 + $0x24] sm:$0xf0] }
  0x1a   :  { %707 = vmatpush.bf16.msra.mxu1 %v1284_v38  ;;  %v1699_v55 = vld [vmem:[#allocation2 + $0xb4] sm:$0xf0]  ;;  %v1396_v58 = vor.u32 %v1731_v53, %v1395_v52  ;;  %v1323_v61 = vld [vmem:[#allocation2 + $0x120] sm:$0xf]  ;;  %v1713_v63 = vld [vmem:[#allocation2 + $0x124] sm:$0xf0]  ;;  %v1196_v4 = vor.u32 %v1681_v60, %v1195_v59 }
  0x1b   :  { %695 = vmatpush.bf16.msra.mxu0 %v1212_v44  ;;  %v1268_v62 = vor.u32 %v1699_v55, %v1267_v54  ;;  %v1387_v0 = vld [vmem:[#allocation2 + $0x1a0] sm:$0xf]  ;;  %v1729_v1 = vld [vmem:[#allocation2 + $0x1a4] sm:$0xf0]  ;;  %v1324_v5 = vor.u32 %v1713_v63, %v1323_v61  ;;  %v1187_v7 = vld [vmem:[#allocation2 + $0x10] sm:$0xf] }
  0x1c   :  { %721 = vmatpush.bf16.msra.mxu2 %v1340_v45  ;;  %v1259_v2 = vld [vmem:[#allocation2 + $0xa0] sm:$0xf]  ;;  %v1697_v3 = vld [vmem:[#allocation2 + $0xa4] sm:$0xf0]  ;;  %v1388_v6 = vor.u32 %v1729_v1, %v1387_v0  ;;  %v1679_v8 = vld [vmem:[#allocation2 + $0x14] sm:$0xf0] }
  0x1d   :  { %734 = vmatpush.bf16.msra.mxu3 %v1404_v46  ;;  %v1315_v9 = vld [vmem:[#allocation2 + $0x110] sm:$0xf]  ;;  %v1260_v10 = vor.u32 %v1697_v3, %v1259_v2  ;;  %v1711_v11 = vld [vmem:[#allocation2 + $0x114] sm:$0xf0]  ;;  %v1179_v16 = vld [vmem:[#allocation2] sm:$0xf]  ;;  %v1188_v17 = vor.u32 %v1679_v8, %v1187_v7 }
  0x1e   :  { %708 = vmatpush.bf16.msra.mxu1 %v1276_v50  ;;  %v1379_v12 = vld [vmem:[#allocation2 + $0x190] sm:$0xf]  ;;  %v1727_v13 = vld [vmem:[#allocation2 + $0x194] sm:$0xf0]  ;;  %v1677_v18 = vld [vmem:[#allocation2 + $0x4] sm:$0xf0]  ;;  %v1316_v21 = vor.u32 %v1711_v11, %v1315_v9 }
  0x1f   :  { %696 = vmatpush.bf16.msra.mxu0 %v1204_v56  ;;  %v1251_v14 = vld [vmem:[#allocation2 + $0x90] sm:$0xf]  ;;  %v1695_v15 = vld [vmem:[#allocation2 + $0x94] sm:$0xf0]  ;;  %v1307_v19 = vld [vmem:[#allocation2 + $0x100] sm:$0xf]  ;;  %v1380_v22 = vor.u32 %v1727_v13, %v1379_v12  ;;  %v1180_v33 = vor.u32 %v1677_v18, %v1179_v16 }
  0x20   :  { %722 = vmatpush.bf16.msra.mxu2 %v1332_v57  ;;  %v1709_v20 = vld [vmem:[#allocation2 + $0x104] sm:$0xf0]  ;;  %v1371_v23 = vld [vmem:[#allocation2 + $0x180] sm:$0xf]  ;;  %v1252_v26 = vor.u32 %v1695_v15, %v1251_v14  ;;  %v1491_v27 = vld [vmem:[#allocation2 + $0x270] sm:$0xf] }
  0x21   :  { %735 = vmatpush.bf16.msra.mxu3 %v1396_v58  ;;  %v1725_v24 = vld [vmem:[#allocation2 + $0x184] sm:$0xf0]  ;;  %v1755_v28 = vld [vmem:[#allocation2 + $0x274] sm:$0xf0]  ;;  %v1690_v29 = vld [vmem:[#allocation2 + $0x74] sm:$0xf]  ;;  %v1308_v37 = vor.u32 %v1709_v20, %v1307_v19 }
  0x22   :  { %709 = vmatpush.bf16.msra.mxu1 %v1268_v62  ;;  %v67_v25 = vld [vmem:[%s2038_s0 + $0x8] sm:$0xff]  ;;  %v1237_v30 = vld [vmem:[#allocation2 + $0x78] sm:$0xf0]  ;;  %v1243_v31 = vld [vmem:[#allocation2 + $0x80] sm:$0xf]  ;;  %v1372_v38 = vor.u32 %v1725_v24, %v1371_v23  ;;  %v1492_v42 = vor.u32 %v1755_v28, %v1491_v27  ;;  %vm688_vm0 = vcmask 130048  }
  0x23   :  { %697 = vmatpush.bf16.msra.mxu0 %v1196_v4  ;;  %v1693_v32 = vld [vmem:[#allocation2 + $0x84] sm:$0xf0]  ;;  %v180_v34 = vunpack.c.l.b16 %v67_v25  ;;  %v1563_v35 = vld [vmem:[#allocation2 + $0x300] sm:$0xf]  ;;  %v1555_v39 = vld [vmem:[#allocation2 + $0x2f0] sm:$0xf]  ;;  %v1240_v43 = vor.u32 %v1690_v29, %v1237_v30  ;;  %v181_v53 = vunpack.c.h.b16 %v67_v25 }
  0x24   :  { %723 = vmatpush.bf16.msra.mxu2 %v1324_v5  ;;  %v1773_v36 = vld [vmem:[#allocation2 + $0x304] sm:$0xf0]  ;;  %v1771_v40 = vld [vmem:[#allocation2 + $0x2f4] sm:$0xf0]  ;;  %v1706_v41 = vld [vmem:[#allocation2 + $0xf4] sm:$0xf]  ;;  %v1244_v44 = vor.u32 %v1693_v32, %v1243_v31 }
  0x25   :  { %736 = vmatpush.bf16.msra.mxu3 %v1388_v6  ;;  %v1301_v45 = vld [vmem:[#allocation2 + $0xf8] sm:$0xf0]  ;;  %v1483_v46 = vld [vmem:[#allocation2 + $0x260] sm:$0xf]  ;;  %v1564_v48 = vor.u32 %v1773_v36, %v1563_v35  ;;  %v1753_v49 = vld [vmem:[#allocation2 + $0x264] sm:$0xf0]  ;;  %v1957_v55 = vpack.c.b16 %v180_v34, %v180_v34  ;;  %v1556_v56 = vor.u32 %v1771_v40, %v1555_v39  ;;  %v1961_v5 = vpack.c.b16 %v181_v53, %v181_v53 }
  0x26   :  { %710 = vmatpush.bf16.msra.mxu1 %v1260_v10  ;;  %v66_v47 = vld [vmem:[%s2038_s0] sm:$0xff]  ;;  %v1229_v51 = vld [vmem:[#allocation2 + $0x68] sm:$0xf0]  ;;  %v1304_v57 = vor.u32 %v1706_v41, %v1301_v45  ;;  %v1769_v59 = vld [vmem:[#allocation2 + $0x2e4] sm:$0xf0]  ;;  %v1484_v61 = vor.u32 %v1753_v49, %v1483_v46  ;;  %vm1141_vm1 = vcmask 261120  }
  0x27   :  { %698 = vmatpush.bf16.msra.mxu0 %v1188_v17  ;;  %v1688_v50 = vld [vmem:[#allocation2 + $0x64] sm:$0xf]  ;;  %v178_v52 = vunpack.c.l.b16 %v66_v47  ;;  %v179_v54 = vunpack.c.h.b16 %v66_v47  ;;  %v1547_v58 = vld [vmem:[#allocation2 + $0x2e0] sm:$0xf]  ;;  %v1293_v0 = vld [vmem:[#allocation2 + $0xe8] sm:$0xf0] }
  0x28   :  { %724 = vmatpush.bf16.msra.mxu2 %v1316_v21  ;;  %v1232_v62 = vor.u32 %v1688_v50, %v1229_v51  ;;  %v1704_v63 = vld [vmem:[#allocation2 + $0xe4] sm:$0xf]  ;;  %v1475_v1 = vld [vmem:[#allocation2 + $0x250] sm:$0xf]  ;;  %v1751_v2 = vld [vmem:[#allocation2 + $0x254] sm:$0xf0]  ;;  %v1548_v7 = vor.u32 %v1769_v59, %v1547_v58 }
  0x29   :  { %737 = vmatpush.bf16.msra.mxu3 %v1380_v22  ;;  %v1959_v60 = vpack.c.b16 %v178_v52, %v178_v52  ;;  %v1686_v3 = vld [vmem:[#allocation2 + $0x54] sm:$0xf]  ;;  %v1221_v4 = vld [vmem:[#allocation2 + $0x58] sm:$0xf0]  ;;  %v1963_v6 = vpack.c.b16 %v179_v54, %v179_v54  ;;  %v1296_v8 = vor.u32 %v1704_v63, %v1293_v0  ;;  %v1539_v9 = vld [vmem:[#allocation2 + $0x2d0] sm:$0xf]  ;;  %v1476_v11 = vor.u32 %v1751_v2, %v1475_v1 }
  0x2a   :  { %711 = vmatpush.bf16.msra.mxu1 %v1252_v26  ;;  %v1767_v10 = vld [vmem:[#allocation2 + $0x2d4] sm:$0xf0]  ;;  %v1224_v12 = vor.u32 %v1686_v3, %v1221_v4  ;;  %v1702_v13 = vld [vmem:[#allocation2 + $0xd4] sm:$0xf]  ;;  %v1285_v14 = vld [vmem:[#allocation2 + $0xd8] sm:$0xf0] }
  0x2b   :  { %699 = vmatpush.bf16.msra.mxu0 %v1180_v33  ;;  %v1467_v15 = vld [vmem:[#allocation2 + $0x240] sm:$0xf]  ;;  %v1749_v16 = vld [vmem:[#allocation2 + $0x244] sm:$0xf0]  ;;  %v1684_v17 = vld [vmem:[#allocation2 + $0x44] sm:$0xf]  ;;  %v1540_v19 = vor.u32 %v1767_v10, %v1539_v9  ;;  %v1288_v20 = vor.u32 %v1702_v13, %v1285_v14 }
  0x2c   :  { %725 = vmatpush.bf16.msra.mxu2 %v1308_v37  ;;  %v1213_v18 = vld [vmem:[#allocation2 + $0x48] sm:$0xf0]  ;;  %v1531_v21 = vld [vmem:[#allocation2 + $0x2c0] sm:$0xf]  ;;  %v1765_v22 = vld [vmem:[#allocation2 + $0x2c4] sm:$0xf0]  ;;  %v1468_v24 = vor.u32 %v1749_v16, %v1467_v15 }
  0x2d   :  { %738 = vmatpush.bf16.msra.mxu3 %v1372_v38  ;;  %v1700_v23 = vld [vmem:[#allocation2 + $0xc4] sm:$0xf]  ;;  %v1216_v25 = vor.u32 %v1684_v17, %v1213_v18  ;;  %v1277_v26 = vld [vmem:[#allocation2 + $0xc8] sm:$0xf0]  ;;  %v1459_v27 = vld [vmem:[#allocation2 + $0x230] sm:$0xf]  ;;  %v1532_v32 = vor.u32 %v1765_v22, %v1531_v21 }
  0x2e   :  { %712 = vmatpush.bf16.msra.mxu1 %v1244_v44  ;;  %700 = vmatmul.bf16.vlgmr.msra.gmra.mxu0 %v1959_v60  ;;  %v1747_v28 = vld [vmem:[#allocation2 + $0x234] sm:$0xf0]  ;;  %v1682_v29 = vld [vmem:[#allocation2 + $0x34] sm:$0xf]  ;;  %v1205_v30 = vld [vmem:[#allocation2 + $0x38] sm:$0xf0]  ;;  %v1280_v34 = vor.u32 %v1700_v23, %v1277_v26 }
  0x2f   :  { %744 = vmatpush.bf16.msrb.mxu0 %v1492_v42  ;;  %726 = vmatmul.bf16.vlgmr.msra.gmra.mxu2 %v1957_v55  ;;  %v69_v31 = vld [vmem:[%s2038_s0 + $0x18] sm:$0xf]  ;;  %v1523_v35 = vld [vmem:[#allocation2 + $0x2b0] sm:$0xf]  ;;  %v1460_v37 = vor.u32 %v1747_v28, %v1459_v27  ;;  %v1208_v38 = vor.u32 %v1682_v29, %v1205_v30  ;;  %v1698_v39 = vld [vmem:[#allocation2 + $0xb4] sm:$0xf] }
  0x30   :  { %777 = vmatpush.bf16.msrb.mxu2 %v1564_v48  ;;  %739 = vmatmul.bf16.vlgmr.msra.gmra.mxu3 %v1961_v5  ;;  %v184_v33 = vunpack.c.l.b16 %v69_v31  ;;  %v1763_v36 = vld [vmem:[#allocation2 + $0x2b4] sm:$0xf0]  ;;  %v1269_v40 = vld [vmem:[#allocation2 + $0xb8] sm:$0xf0]  ;;  %v1451_v41 = vld [vmem:[#allocation2 + $0x220] sm:$0xf] }
  0x31   :  { %783 = vmatpush.bf16.msrb.mxu3 %v1240_v43  ;;  %713 = vmatmul.bf16.vlgmr.msra.gmra.mxu1 %v1963_v6  ;;  %v1745_v42 = vld [vmem:[#allocation2 + $0x224] sm:$0xf0]  ;;  %v1680_v43 = vld [vmem:[#allocation2 + $0x24] sm:$0xf]  ;;  %v1197_v44 = vld [vmem:[#allocation2 + $0x28] sm:$0xf0]  ;;  %v1524_v45 = vor.u32 %v1763_v36, %v1523_v35  ;;  %v1272_v47 = vor.u32 %v1698_v39, %v1269_v40 }
  0x32   :  { %757 = vmatpush.bf16.msrb.mxu1 %v1556_v56  ;;  %v1972_v46 = vpack.c.b16 %v184_v33, %v184_v33  ;;  %v1515_v48 = vld [vmem:[#allocation2 + $0x2a0] sm:$0xf]  ;;  %v1761_v49 = vld [vmem:[#allocation2 + $0x2a4] sm:$0xf0]  ;;  %v1452_v50 = vor.u32 %v1745_v42, %v1451_v41  ;;  %v1200_v51 = vor.u32 %v1680_v43, %v1197_v44  ;;  %v1696_v52 = vld [vmem:[#allocation2 + $0xa4] sm:$0xf] }
  0x33   :  { %745 = vmatpush.bf16.msrb.mxu0 %v1484_v61  ;;  %v1261_v53 = vld [vmem:[#allocation2 + $0xa8] sm:$0xf0]  ;;  %v1443_v54 = vld [vmem:[#allocation2 + $0x210] sm:$0xf]  ;;  %v1743_v56 = vld [vmem:[#allocation2 + $0x214] sm:$0xf0]  ;;  %v1516_v59 = vor.u32 %v1761_v49, %v1515_v48 }
  0x34   :  { %796 = vmatpush.bf16.msra.mxu2 %v1304_v57  ;;  %v1678_v57 = vld [vmem:[#allocation2 + $0x14] sm:$0xf]  ;;  %v1189_v58 = vld [vmem:[#allocation2 + $0x18] sm:$0xf0]  ;;  %v1507_v61 = vld [vmem:[#allocation2 + $0x290] sm:$0xf]  ;;  %v1444_v2 = vor.u32 %v1743_v56, %v1443_v54 }
  0x35   :  { %784 = vmatpush.bf16.msrb.mxu3 %v1232_v62  ;;  %v1264_v62 = vor.u32 %v1696_v52, %v1261_v53  ;;  %v1759_v63 = vld [vmem:[#allocation2 + $0x294] sm:$0xf0]  ;;  %v1694_v0 = vld [vmem:[#allocation2 + $0x94] sm:$0xf]  ;;  %v1253_v1 = vld [vmem:[#allocation2 + $0x98] sm:$0xf0]  ;;  %v1192_v3 = vor.u32 %v1678_v57, %v1189_v58 }
  0x36   :  { %758 = vmatpush.bf16.msrb.mxu1 %v1548_v7  ;;  %v1435_v4 = vld [vmem:[#allocation2 + $0x200] sm:$0xf]  ;;  %v1741_v7 = vld [vmem:[#allocation2 + $0x204] sm:$0xf0]  ;;  %v1676_v9 = vld [vmem:[#allocation2 + $0x4] sm:$0xf]  ;;  %v1256_v16 = vor.u32 %v1694_v0, %v1253_v1 }
  0x37   :  { %746 = vmatpush.bf16.msrb.mxu0 %v1476_v11  ;;  %v1181_v10 = vld [vmem:[#allocation2 + $0x8] sm:$0xf0]  ;;  %v1722_v11 = vld [vmem:[#allocation2 + $0x174] sm:$0xf]  ;;  %v1365_v13 = vld [vmem:[#allocation2 + $0x178] sm:$0xf0] }
  0x38   :  { %797 = vmatpush.bf16.msra.mxu2 %v1296_v8  ;;  %v68_v8 = vld [vmem:[%s2038_s0 + $0x10] sm:$0xff]  ;;  %v1493_v15 = vld [vmem:[#allocation2 + $0x278] sm:$0xf0]  ;;  %v1499_v17 = vld [vmem:[#allocation2 + $0x280] sm:$0xf]  ;;  %v1184_v21 = vor.u32 %v1676_v9, %v1181_v10  ;;  %s1894_s0 = smov [#allocation7]  }
  0x39   :  { %785 = vmatpush.bf16.msrb.mxu3 %v1224_v12  ;;  %v1508_v12 = vor.u32 %v1759_v63, %v1507_v61  ;;  %v1754_v14 = vld [vmem:[#allocation2 + $0x274] sm:$0xf]  ;;  %v1757_v18 = vld [vmem:[#allocation2 + $0x284] sm:$0xf0]  ;;  %v1692_v22 = vld [vmem:[#allocation2 + $0x84] sm:$0xf]  ;;  %v183_v30 = vunpack.c.h.b16 %v68_v8 }
  0x3a   :  { %759 = vmatpush.bf16.msrb.mxu1 %v1540_v19  ;;  %v182_v19 = vunpack.c.l.b16 %v68_v8  ;;  %v1245_v23 = vld [vmem:[#allocation2 + $0x88] sm:$0xf0]  ;;  %v1496_v26 = vor.u32 %v1754_v14, %v1493_v15  ;;  %v1429_v27 = vld [vmem:[#allocation2 + $0x1f8] sm:$0xf0]  ;;  %v1770_v28 = vld [vmem:[#allocation2 + $0x2f4] sm:$0xf]  ;;  %v1500_v31 = vor.u32 %v1757_v18, %v1499_v17 }
  0x3b   :  { %747 = vmatpush.bf16.msrb.mxu0 %v1468_v24  ;;  %v1738_v24 = vld [vmem:[#allocation2 + $0x1f4] sm:$0xf]  ;;  %v1557_v29 = vld [vmem:[#allocation2 + $0x2f8] sm:$0xf0]  ;;  %v1357_v33 = vld [vmem:[#allocation2 + $0x168] sm:$0xf0]  ;;  %v1248_v35 = vor.u32 %v1692_v22, %v1245_v23  ;;  %v1981_v41 = vpack.c.b16 %v183_v30, %v183_v30 }
  0x3c   :  { %798 = vmatpush.bf16.msra.mxu2 %v1288_v20  ;;  %v1436_v20 = vor.u32 %v1741_v7, %v1435_v4  ;;  %v1752_v36 = vld [vmem:[#allocation2 + $0x264] sm:$0xf]  ;;  %v1560_v39 = vor.u32 %v1770_v28, %v1557_v29  ;;  %v1421_v43 = vld [vmem:[#allocation2 + $0x1e8] sm:$0xf0]  ;;  %v1718_v48 = vld [vmem:[#allocation2 + $0x154] sm:$0xf] }
  0x3d   :  { %786 = vmatpush.bf16.msrb.mxu3 %v1216_v25  ;;  %v1368_v25 = vor.u32 %v1722_v11, %v1365_v13  ;;  %v1736_v40 = vld [vmem:[#allocation2 + $0x1e4] sm:$0xf]  ;;  %v1349_v49 = vld [vmem:[#allocation2 + $0x158] sm:$0xf0]  ;;  %v1734_v54 = vld [vmem:[#allocation2 + $0x1d4] sm:$0xf] }
  0x3e   :  { %760 = vmatpush.bf16.msrb.mxu1 %v1532_v32  ;;  %v1720_v32 = vld [vmem:[#allocation2 + $0x164] sm:$0xf]  ;;  %v1424_v52 = vor.u32 %v1736_v40, %v1421_v43  ;;  %v1413_v56 = vld [vmem:[#allocation2 + $0x1d8] sm:$0xf0]  ;;  %v1766_v57 = vld [vmem:[#allocation2 + $0x2d4] sm:$0xf]  ;;  %v1352_v58 = vor.u32 %v1718_v48, %v1349_v49 }
  0x3f   :  { %748 = vmatpush.bf16.msrb.mxu0 %v1460_v37  ;;  %1569 = vmatmul.msk.bf16.vlgmr.msrb.gmra.mxu2 %vm688_vm0, %v1972_v46  ;;  %v1485_v37 = vld [vmem:[#allocation2 + $0x268] sm:$0xf0]  ;;  %v1360_v42 = vor.u32 %v1720_v32, %v1357_v33  ;;  %v1768_v44 = vld [vmem:[#allocation2 + $0x2e4] sm:$0xf]  ;;  %v1333_v13 = vld [vmem:[#allocation2 + $0x138] sm:$0xf0] }
  0x40   :  { %799 = vmatpush.bf16.msra.mxu2 %v1280_v34  ;;  %v1979_v34 = vpack.c.b16 %v182_v19, %v182_v19  ;;  %v1716_v61 = vld [vmem:[#allocation2 + $0x144] sm:$0xf]  ;;  %v1341_v63 = vld [vmem:[#allocation2 + $0x148] sm:$0xf0]  ;;  %v1746_v14 = vld [vmem:[#allocation2 + $0x234] sm:$0xf] }
  0x41   :  { %787 = vmatpush.bf16.msrb.mxu3 %v1208_v38  ;;  %v1432_v38 = vor.u32 %v1738_v24, %v1429_v27  ;;  %v1748_v0 = vld [vmem:[#allocation2 + $0x244] sm:$0xf]  ;;  %v1469_v1 = vld [vmem:[#allocation2 + $0x248] sm:$0xf0]  ;;  %v1344_v7 = vor.u32 %v1716_v61, %v1341_v63  ;;  %v1397_v18 = vld [vmem:[#allocation2 + $0x1b8] sm:$0xf0] }
  0x42   :  { %761 = vmatpush.bf16.msrb.mxu1 %v1524_v45  ;;  %v1549_v45 = vld [vmem:[#allocation2 + $0x2e8] sm:$0xf0]  ;;  %v1732_v4 = vld [vmem:[#allocation2 + $0x1c4] sm:$0xf]  ;;  %v1472_v11 = vor.u32 %v1748_v0, %v1469_v1  ;;  %v1762_v19 = vld [vmem:[#allocation2 + $0x2b4] sm:$0xf] }
  0x43   :  { %749 = vmatpush.bf16.msrb.mxu0 %v1452_v50  ;;  %v1750_v50 = vld [vmem:[#allocation2 + $0x254] sm:$0xf]  ;;  %v1552_v53 = vor.u32 %v1768_v44, %v1549_v45  ;;  %v1405_v8 = vld [vmem:[#allocation2 + $0x1c8] sm:$0xf0]  ;;  %v1764_v9 = vld [vmem:[#allocation2 + $0x2c4] sm:$0xf] }
  0x44   :  { %800 = vmatpush.bf16.msra.mxu2 %v1272_v47  ;;  %v1488_v47 = vor.u32 %v1752_v36, %v1485_v37  ;;  %v1533_v10 = vld [vmem:[#allocation2 + $0x2c8] sm:$0xf0]  ;;  %v1408_v15 = vor.u32 %v1732_v4, %v1405_v8  ;;  %v1712_v22 = vld [vmem:[#allocation2 + $0x124] sm:$0xf]  ;;  %v1317_v36 = vld [vmem:[#allocation2 + $0x118] sm:$0xf0] }
  0x45   :  { %788 = vmatpush.bf16.msrb.mxu3 %v1200_v51  ;;  %v1477_v51 = vld [vmem:[#allocation2 + $0x258] sm:$0xf0]  ;;  %v1325_v23 = vld [vmem:[#allocation2 + $0x128] sm:$0xf0]  ;;  %v1744_v24 = vld [vmem:[#allocation2 + $0x224] sm:$0xf] }
  0x46   :  { %762 = vmatpush.bf16.msrb.mxu1 %v1516_v59  ;;  %v1541_v59 = vld [vmem:[#allocation2 + $0x2d8] sm:$0xf0]  ;;  %v1728_v28 = vld [vmem:[#allocation2 + $0x1a4] sm:$0xf]  ;;  %v1328_v29 = vor.u32 %v1712_v22, %v1325_v23  ;;  %v1389_v30 = vld [vmem:[#allocation2 + $0x1a8] sm:$0xf0] }
  0x47   :  { %750 = vmatpush.bf16.msrb.mxu0 %v1444_v2  ;;  %v1416_v2 = vor.u32 %v1734_v54, %v1413_v56  ;;  %v1517_v32 = vld [vmem:[#allocation2 + $0x2a8] sm:$0xf0]  ;;  %v1742_v37 = vld [vmem:[#allocation2 + $0x214] sm:$0xf]  ;;  %v1381_v44 = vld [vmem:[#allocation2 + $0x198] sm:$0xf0] }
  0x48   :  { %801 = vmatpush.bf16.msra.mxu2 %v1264_v62  ;;  %v1480_v62 = vor.u32 %v1750_v50, %v1477_v51  ;;  %v1758_v45 = vld [vmem:[#allocation2 + $0x294] sm:$0xf]  ;;  %v1708_v49 = vld [vmem:[#allocation2 + $0x104] sm:$0xf]  ;;  %v1309_v50 = vld [vmem:[#allocation2 + $0x108] sm:$0xf0] }
  0x49   :  { %789 = vmatpush.bf16.msrb.mxu3 %v1192_v3  ;;  %v1544_v3 = vor.u32 %v1766_v57, %v1541_v59  ;;  %v1740_v51 = vld [vmem:[#allocation2 + $0x204] sm:$0xf]  ;;  %v1565_v54 = vld [vmem:[#allocation2 + $0x308] sm:$0xf0]  ;;  %v1779_v8 = vld [vmem:[#allocation5 + $0x28] sm:$0xff]  ;;  %s1164_s29 = sshll.u32 %s1894_s0, 4  ;;  %s1165_s29 = int_to_ptr.vmem [resolvable:$true] %s1164_s29 }
  0x4a   :  { %763 = vmatpush.bf16.msrb.mxu1 %v1508_v12  ;;  %v1714_v12 = vld [vmem:[#allocation2 + $0x134] sm:$0xf]  ;;  %v1724_v59 = vld [vmem:[#allocation2 + $0x184] sm:$0xf]  ;;  %v1373_v61 = vld [vmem:[#allocation2 + $0x188] sm:$0xf0] }
  0x4b   :  { %751 = vmatpush.bf16.msrb.mxu0 %v1436_v20  ;;  %v1336_v17 = vor.u32 %v1714_v12, %v1333_v13  ;;  %v1525_v20 = vld [vmem:[#allocation2 + $0x2b8] sm:$0xf0]  ;;  %v1756_v63 = vld [vmem:[#allocation2 + $0x284] sm:$0xf]  ;;  %v1501_v0 = vld [vmem:[#allocation2 + $0x288] sm:$0xf0] }
  0x4c   :  { %802 = vmatpush.bf16.msra.mxu2 %v1256_v16  ;;  %v1730_v16 = vld [vmem:[#allocation2 + $0x1b4] sm:$0xf]  ;;  %v1528_v27 = vor.u32 %v1762_v19, %v1525_v20  ;;  %v1781_v4 = vld [vmem:[#allocation5 + $0x38] sm:$0xff]  ;;  %v1787_v23 = vld [vmem:[#allocation5 + $0x68] sm:$0xff]  ;;  %s1166_s10 = sshll.u32 %s2047_s9, 4  ;;  %s1167_s10 = int_to_ptr.hbm [resolvable:$true] %s1166_s10 }
  0x4d   :  { %790 = vmatpush.bf16.msrb.mxu3 %v1184_v21 }
  0x4e   :  { %764 = vmatpush.bf16.msrb.mxu1 %v1500_v31  ;;  %752 = vmatmul.bf16.vlgmr.msrb.gmra.mxu0 %v1979_v34  ;;  %v1760_v31 = vld [vmem:[#allocation2 + $0x2a4] sm:$0xf] }
  0x4f   :  { %809 = vmatpush.bf16.msra.mxu0 %v1368_v25  ;;  %v1453_v25 = vld [vmem:[#allocation2 + $0x228] sm:$0xf0]  ;;  %v1520_v40 = vor.u32 %v1760_v31, %v1517_v32 }
  0x50   :  { %803 = vmatpush.bf16.msra.mxu2 %v1248_v35  ;;  %791 = vmatmul.bf16.vlgmr.msrb.gmra.mxu3 %v1959_v60  ;;  %v1536_v60 = vor.u32 %v1764_v9, %v1533_v10  ;;  %v1456_v33 = vor.u32 %v1744_v24, %v1453_v25  ;;  %v1710_v35 = vld [vmem:[#allocation2 + $0x114] sm:$0xf]  ;;  %v1777_v10 = vld [vmem:[#allocation5 + $0x18] sm:$0xff] }
  0x51   :  { %835 = vmatpush.bf16.msra.mxu3 %v1496_v26  ;;  %765 = vmatmul.bf16.vlgmr.msrb.gmra.mxu1 %v1981_v41  ;;  %v1400_v26 = vor.u32 %v1730_v16, %v1397_v18  ;;  %v1320_v43 = vor.u32 %v1710_v35, %v1317_v36  ;;  %v1778_v9 = vld [vmem:[#allocation5 + $0x20] sm:$0xff]  ;;  %v1785_v31 = vld [vmem:[#allocation5 + $0x58] sm:$0xff]  ;;  %v1784_v36 = vld [vmem:[#allocation5 + $0x50] sm:$0xff] }
  0x52   :  { %822 = vmatpush.bf16.msra.mxu1 %v1432_v38  ;;  %v1445_v38 = vld [vmem:[#allocation2 + $0x218] sm:$0xf0] }
  0x53   :  { %810 = vmatpush.bf16.msra.mxu0 %v1360_v42  ;;  %804 = vmatmul.bf16.vlgmr.msra.gmra.mxu2 %v1963_v6  ;;  %v1461_v6 = vld [vmem:[#allocation2 + $0x238] sm:$0xf0]  ;;  %v1726_v42 = vld [vmem:[#allocation2 + $0x194] sm:$0xf]  ;;  %v1448_v48 = vor.u32 %v1742_v37, %v1445_v38 }
  0x54   :  { %848 = vmatpush.bf16.msrb.mxu2 %v1560_v39  ;;  %v1464_v21 = vor.u32 %v1746_v14, %v1461_v6  ;;  %v1392_v39 = vor.u32 %v1728_v28, %v1389_v30  ;;  %v1384_v56 = vor.u32 %v1726_v42, %v1381_v44  ;;  %v1789_v6 = vld [vmem:[#allocation5 + $0x78] sm:$0xff]  ;;  %v1783_v42 = vld [vmem:[#allocation5 + $0x48] sm:$0xff] }
  0x55   :  { %836 = vmatpush.bf16.msra.mxu3 %v1488_v47  ;;  %v1509_v47 = vld [vmem:[#allocation2 + $0x298] sm:$0xf0] }
  0x56   :  { %823 = vmatpush.bf16.msra.mxu1 %v1424_v52  ;;  %v1437_v52 = vld [vmem:[#allocation2 + $0x208] sm:$0xf0]  ;;  %v1512_v57 = vor.u32 %v1758_v45, %v1509_v47 }
  0x57   :  { %811 = vmatpush.bf16.msra.mxu0 %v1352_v58  ;;  %v1312_v58 = vor.u32 %v1708_v49, %v1309_v50 }
  0x58   :  { %849 = vmatpush.bf16.msrb.mxu2 %v1552_v53  ;;  %v1772_v53 = vld [vmem:[#allocation2 + $0x304] sm:$0xf] }
  0x59   :  { %837 = vmatpush.bf16.msra.mxu3 %v1480_v62  ;;  %v1440_v62 = vor.u32 %v1740_v51, %v1437_v52  ;;  %v1568_v1 = vor.u32 %v1772_v53, %v1565_v54 }
  0x5a   :  { %824 = vmatpush.bf16.msra.mxu1 %v1416_v2  ;;  %v1376_v2 = vor.u32 %v1724_v59, %v1373_v61 }
  0x5b   :  { %812 = vmatpush.bf16.msra.mxu0 %v1344_v7  ;;  %v1780_v7 = vld [vmem:[#allocation5 + $0x30] sm:$0xff] }
  0x5c   :  { %850 = vmatpush.bf16.msrb.mxu2 %v1544_v3  ;;  %v1504_v3 = vor.u32 %v1756_v63, %v1501_v0 }
  0x5d   :  { %838 = vmatpush.bf16.msra.mxu3 %v1472_v11 }
  0x5e   :  { %825 = vmatpush.bf16.msra.mxu1 %v1408_v15 }
  0x5f   :  { %813 = vmatpush.bf16.msra.mxu0 %v1336_v17  ;;  %v1788_v17 = vld [vmem:[#allocation5 + $0x70] sm:$0xff] }
  0x60   :  { %851 = vmatpush.bf16.msrb.mxu2 %v1536_v60 }
  0x61   :  { %839 = vmatpush.bf16.msra.mxu3 %v1464_v21 }
  0x62   :  { %826 = vmatpush.bf16.msra.mxu1 %v1400_v26  ;;  %v1786_v26 = vld [vmem:[#allocation5 + $0x60] sm:$0xff] }
  0x63   :  { %814 = vmatpush.bf16.msra.mxu0 %v1328_v29 }
  0x64   :  { %852 = vmatpush.bf16.msrb.mxu2 %v1528_v27 }
  0x65   :  { %840 = vmatpush.bf16.msra.mxu3 %v1456_v33 }
  0x66   :  { %827 = vmatpush.bf16.msra.mxu1 %v1392_v39 }
  0x67   :  { %815 = vmatpush.bf16.msra.mxu0 %v1320_v43  ;;  %v1782_v43 = vld [vmem:[#allocation5 + $0x40] sm:$0xff] }
  0x68   :  { %853 = vmatpush.bf16.msrb.mxu2 %v1520_v40 }
  0x69   :  { %841 = vmatpush.bf16.msra.mxu3 %v1448_v48 }
  0x6a   :  { %828 = vmatpush.bf16.msra.mxu1 %v1384_v56 }
  0x6b   :  { %816 = vmatpush.bf16.msra.mxu0 %v1312_v58 }
  0x6c   :  { %854 = vmatpush.bf16.msrb.mxu2 %v1512_v57 }
  0x6d   :  { %842 = vmatpush.bf16.msra.mxu3 %v1440_v62 }
  0x6e   :  { %829 = vmatpush.bf16.msra.mxu1 %v1376_v2  ;;  %817 = vmatmul.bf16.vlgmr.msra.gmra.mxu0 %v1957_v55  ;;  %v1776_v55 = vld [vmem:[#allocation5 + $0x10] sm:$0xff] }
  0x6f   :  { %868 = vmatpush.bf16.msrb.mxu0 %v1568_v1 }
  0x70   :  { %843 = vmatmul.bf16.vlgmr.msra.gmra.mxu3 %v1979_v34  ;;  %855 = vmatpush.bf16.msrb.mxu2 %v1504_v3  ;;  %v1775_v34 = vld [vmem:[#allocation5 + $0x8] sm:$0xff] }
  0x71   :  { %830 = vmatmul.bf16.vlgmr.msra.gmra.mxu1 %v1961_v5  ;;  %1023 = vmatpush.bf16.msrb.mxu3 %v1789_v6 }
  0x72   :  { %1010 = vmatpush.bf16.msrb.mxu1 %v1781_v4 }
  0x73   :  { %856 = vmatmul.bf16.vlgmr.msrb.gmra.mxu2 %v1981_v41  ;;  %v1774_v41 = vld [vmem:[#allocation5] sm:$0xff] }
  0x75   :  { %1024 = vmatpush.bf16.msrb.mxu3 %v1788_v17 }
  0x76   :  { %1011 = vmatpush.bf16.msrb.mxu1 %v1780_v7  ;;  %v1797_v7 = vld [vmem:[%s2043_s5 + $0x38] sm:$0xff] }
  0x77   :  { %1106 = vmatpush.bf16.msra.mxu0 %v1797_v7 }
  0x79   :  { %1025 = vmatpush.bf16.msrb.mxu3 %v1787_v23 }
  0x7a   :  { %1012 = vmatpush.bf16.msrb.mxu1 %v1779_v8  ;;  %v1796_v8 = vld [vmem:[%s2043_s5 + $0x30] sm:$0xff] }
  0x7b   :  { %1107 = vmatpush.bf16.msra.mxu0 %v1796_v8 }
  0x7d   :  { %1026 = vmatpush.bf16.msrb.mxu3 %v1786_v26 }
  0x7e   :  { %1570 = vmatmul.msk.bf16.vlgmr.msrb.gmra.mxu0 %vm688_vm0, %v1972_v46  ;;  %1013 = vmatpush.bf16.msrb.mxu1 %v1778_v9  ;;  %v168_v46 = vld [vmem:[%s2040_s2] sm:$0x3]  ;;  %v1795_v9 = vld [vmem:[%s2043_s5 + $0x28] sm:$0xff] }
  0x7f   :  { %v170_v60 = vperm.slane %v168_v46, 0  ;;  %v171_v47 = vperm.slane %v168_v46, 1  ;;  %1108 = vmatpush.bf16.msra.mxu0 %v1795_v9  ;;  %v1799_v46 = vld [vmem:[%s2045_s7 + $0x8] sm:$0xff] }
  0x80   :  { %1151 = vmatpush.bf16.msra.mxu2 %v1799_v46 }
  0x81   :  { %1027 = vmatpush.bf16.msrb.mxu3 %v1785_v31 }
  0x82   :  { %1014 = vmatpush.bf16.msrb.mxu1 %v1777_v10  ;;  %v1794_v10 = vld [vmem:[%s2043_s5 + $0x20] sm:$0xff] }
  0x83   :  { %1109 = vmatpush.bf16.msra.mxu0 %v1794_v10 }
  0x85   :  { %1028 = vmatpush.bf16.msrb.mxu3 %v1784_v36 }
  0x86   :  { %1015 = vmatpush.bf16.msrb.mxu1 %v1776_v55  ;;  %v1793_v55 = vld [vmem:[%s2043_s5 + $0x18] sm:$0xff] }
  0x87   :  { %1110 = vmatpush.bf16.msra.mxu0 %v1793_v55 }
  0x89   :  { %1029 = vmatpush.bf16.msrb.mxu3 %v1783_v42 }
  0x8a   :  { %1016 = vmatpush.bf16.msrb.mxu1 %v1775_v34  ;;  %v1792_v34 = vld [vmem:[%s2043_s5 + $0x10] sm:$0xff] }
  0x8b   :  { %1111 = vmatpush.bf16.msra.mxu0 %v1792_v34 }
  0x8d   :  { %1030 = vmatpush.bf16.msrb.mxu3 %v1782_v43 }
  0x8e   :  { %1017 = vmatpush.bf16.msrb.mxu1 %v1774_v41  ;;  %v1791_v41 = vld [vmem:[%s2043_s5 + $0x8] sm:$0xff] }
  0x8f   :  { %1112 = vmatpush.bf16.msra.mxu0 %v1791_v41 }
  0xab   :  { %v701_v11 = vpop.f32.mrf.mxu0 }
  0xac   :  { %v702_v18 = vadd.f32 %v701_v11, %v170_v60 }
  0xae   :  { %v714_v5 = vpop.f32.mrf.mxu1 }
  0xaf   :  { %v715_v20 = vadd.f32 %v714_v5, %v702_v18 }
  0xb2   :  { %v727_v12 = vpop.f32.mrf.mxu2 }
  0xb3   :  { %v740_v13 = vpop.f32.mrf.mxu3  ;;  %v703_v14 = vpop.f32.mrf.mxu0  ;;  %v728_v22 = vadd.f32 %v727_v12, %v715_v20  ;;  %v1790_v12 = vld [vmem:[%s2043_s5] sm:$0xff] }
  0xb4   :  { %1113 = vmatpush.bf16.msra.mxu0 %v1790_v12  ;;  %v1807_v14 = vld [vmem:[%s2042_s4] ss:$0 sm:$0xff] }
  0xb5   :  { %v741_v24 = vadd.f32 %v740_v13, %v728_v22  ;;  %v1798_v13 = vld [vmem:[%s2045_s7] sm:$0xff] }
  0xb6   :  { %v716_v15 = vpop.f32.mrf.mxu1  ;;  %1152 = vmatpush.bf16.msra.mxu2 %v1798_v13 }
  0xba   :  { %v729_v16 = vpop.f32.mrf.mxu2 }
  0xbb   :  { %v742_v19 = vpop.f32.mrf.mxu3 }
  0xbc   :  { %v1808_v19 = vld [vmem:[%s2044_s6] ss:$0 sm:$0xff] }
  0xc2   :  { %v779_v21 = vpop.f32.mrf.mxu2 }
  0xca   :  { %v781_v28 = vpop.f32.mrf.mxu2 }
  0xcb   :  { %v753_v25 = vpop.f32.mrf.mxu0 }
  0xcc   :  { %v754_v27 = vadd.f32 %v753_v25, %v741_v24  ;;  %v1809_v25 = vld [vmem:[%s2046_s8] ss:$0 sm:$0xff] }
  0xce   :  { %v766_v29 = vpop.f32.mrf.mxu1 }
  0xcf   :  { %v767_v30 = vadd.f32 %v766_v29, %v754_v27 }
  0xd1   :  { %v780_v32 = vadd.f32 %v779_v21, %v767_v30 }
  0xd3   :  { %v874_v33 = vmax.f32 %v780_v32, 0.0  ;;  %v755_v35 = vpop.f32.mrf.mxu0  ;;  %v792_v39 = vpop.f32.mrf.mxu3 }
  0xd4   :  { %v793_v48 = vadd.f32 %v792_v39, %v171_v47 }
  0xd5   :  { %v876_v37 = vpack.c.bf16 %v874_v33, %v874_v33 }
  0xd6   :  { %v805_v38 = vpop.f32.mrf.mxu2  ;;  %v768_v40 = vpop.f32.mrf.mxu1 }
  0xd7   :  { %1018 = vmatmul.bf16.vlgmr.msrb.gmra.mxu1 %v876_v37  ;;  %v806_v50 = vadd.f32 %v805_v38, %v793_v48 }
  0xdb   :  { %v794_v45 = vpop.f32.mrf.mxu3 }
  0xde   :  { %v807_v44 = vpop.f32.mrf.mxu2 }
  0xeb   :  { %v818_v49 = vpop.f32.mrf.mxu0 }
  0xec   :  { %v819_v52 = vadd.f32 %v818_v49, %v806_v50 }
  0xee   :  { %v831_v51 = vpop.f32.mrf.mxu1 }
  0xef   :  { %v832_v56 = vadd.f32 %v831_v51, %v819_v52 }
  0xf3   :  { %v844_v53 = vpop.f32.mrf.mxu3  ;;  %v820_v54 = vpop.f32.mrf.mxu0 }
  0xf4   :  { %v845_v58 = vadd.f32 %v844_v53, %v832_v56 }
  0xf6   :  { %v857_v57 = vpop.f32.mrf.mxu2  ;;  %v833_v59 = vpop.f32.mrf.mxu1 }
  0xf7   :  { %v858_v61 = vadd.f32 %v857_v57, %v845_v58 }
  0xfb   :  { %v846_v62 = vpop.f32.mrf.mxu3  ;;  %v870_v63 = vpop.f32.mrf.mxu0 }
  0xfc   :  { %v871_v0 = vadd.f32 %v870_v63, %v858_v61 }
  0xfe   :  { %v859_v1 = vpop.f32.mrf.mxu2  ;;  %v875_v2 = vmax.f32 %v871_v0, 0.0 }
 0x100   :  { %v877_v3 = vpack.c.bf16 %v875_v2, %v875_v2 }
 0x102   :  { %1031 = vmatmul.bf16.vlgmr.msrb.gmra.mxu3 %v877_v3 }
 0x103   :  { %v872_v4 = vpop.f32.mrf.mxu0 }
 0x154   :  { %v1019_v11 = vpop.f32.mrf.mxu1 }
 0x155   :  { %v1020_v6 = vadd.f32 %v1807_v14, %v1019_v11 }
 0x15c   :  { %v1021_v5 = vpop.f32.mrf.mxu1 }
 0x185   :  { %v1032_v15 = vpop.f32.mrf.mxu3 }
 0x186   :  { %v1033_v60 = vadd.f32 %v1032_v15, %v1020_v6 }
 0x188   :  { %v1036_v16 = vmax.f32 %v1033_v60, 0.0 }
 0x18a   :  { %v1037_v17 = vpack.c.bf16 %v1036_v16, %v1036_v16 }
 0x18c   :  { %1114 = vmatmul.bf16.vlgmr.msra.gmra.mxu0 %v1037_v17 }
 0x18d   :  { %v1034_v18 = vpop.f32.mrf.mxu3 }
 0x209   :  { %v1115_v20 = vpop.f32.mrf.mxu0 }
 0x20a   :  { %v1116_v21 = vadd.f32 %v1808_v19, %v1115_v20 }
 0x20c   :  { %v1119_v22 = vmax.f32 %v1116_v21, 0.0 }
 0x20e   :  { %v1120_v23 = vpack.c.bf16 %v1119_v22, %v1119_v22 }
 0x210   :  { %1675 = vmatmul.msk.bf16.vlgmr.msra.gmra.mxu2 %vm1141_vm1, %v1120_v23 }
 0x211   :  { %v1117_v24 = vpop.f32.mrf.mxu0 }
 0x293   :  { %v1154_v26 = vpop.f32.mrf.mxu2 }
 0x294   :  { %v1155_v27 = vadd.f32 %v1809_v25, %v1154_v26 }
 0x296   :  { %1158 = vst [vmem:[#allocation7] sm:$0xff] %v1155_v27 }
 0x297   :  { %1169 = dma.vmem_to_hbm [thread:$0]  %s1165_s29, 128, %s1167_s10, [#allocation4]  }
 0x29b   :  { %v1156_v28 = vpop.f32.mrf.mxu2 }
 0x29c   :  { %1886 = dma.done.wait [#allocation4], 128  }
 0x29d   :  { %1887 = vsyncadd [#allocation4], 4294967168 }
 0x29e   :  { %1174 = vsyncpa [#allocation3], 1 }
 0x29f   :  { %1175 = vsyncpa [#allocation6], 1 }
 0x2a0   :  { %1176 = vsyncpa [#allocation4], 1 }

</bundles_post_ra>
